<compile_context>
chip_gen: v5e
topology: v5e:2x2
jax: 0.10.0
libtpu: 0.0.40
codegen_flags: <defaults>
</compile_context>

<pallas_src>
import functools

import jax
import jax.numpy as jnp
from jax import lax
from jax.experimental import pallas as pl
from jax.experimental.pallas import tpu as pltpu


# ---------------------------------------------------------------------------
# Device-aware helpers
# ---------------------------------------------------------------------------
def _device_kind():
    try:
        return jax.devices()[0].device_kind.lower()
    except Exception:
        return ""


def _vmem_capacity_bytes():
    try:
        cap = int(pltpu.get_tpu_info().vmem_capacity_bytes)
        if cap > 0:
            return cap
    except Exception:
        pass
    kind = _device_kind()
    if "v7" in kind:
        return 64 << 20           # v7x: 64 MiB per TensorCore
    if "v5" in kind or "v6" in kind:
        return 128 << 20          # v5e / v6e: 128 MiB
    return 64 << 20               # unknown: be conservative


def _bf16_eup_ok():
    # bf16 exp on the EUP is profitable on v6e/v7x only (v5e has no bf16 EUP/VPU).
    kind = _device_kind()
    return ("v6" in kind) or ("v7" in kind)


def _tile_candidates(n):
    """Descending tile sizes that divide n and are multiples of 8 (plus n itself)."""
    cands = {n}
    for t in range(8, n + 1, 8):
        if n % t == 0:
            cands.add(t)
    return sorted(cands, reverse=True)


def _vmem_limit(working_set_bytes, capacity):
    est = int(working_set_bytes) + (8 << 20)   # headroom for padding / scratch
    return int(max(16 << 20, min(est, int(capacity * 0.9))))


def _pick_head_block(num_heads, head_dim, target_gd):
    """Largest divisor Hblk of num_heads with Hblk*head_dim <= target_gd,
    bumped up to >=128 lanes when achievable (lane-dense stores, MXU fill)."""
    best = 1
    for h in range(1, num_heads + 1):
        if num_heads % h == 0 and h * head_dim <= max(target_gd, head_dim):
            best = h
    if best * head_dim < 128:
        for h in range(best + 1, num_heads + 1):
            if num_heads % h == 0 and h * head_dim >= 128:
                best = h
                break
    return best


# ---------------------------------------------------------------------------
# Kernel A: fused QKV projection (head-group-major, lane-dense output blocks)
# ---------------------------------------------------------------------------
def _qkv_proj_kernel(x_ref, w_ref, b_ref, q_ref, k_ref, v_ref, *, gd, compute_dtype):
    # x_ref : (1, tn, C)            tokens
    # w_ref : (1, C, 3*Gd)          fused per-group q|k|v weights (scale folded into q)
    # b_ref : (1, 1, 3*Gd)          fused bias (q*scale | 0 | v), f32
    # out   : (1, 1, tn, Gd) each   head-group-major q / k / v
    x = x_ref[0].astype(compute_dtype)                                   # (tn, C)
    y = jnp.dot(x, w_ref[0], preferred_element_type=jnp.float32) + b_ref[0]
    q_ref[0, 0] = y[:, :gd].astype(q_ref.dtype)
    k_ref[0, 0] = y[:, gd:2 * gd].astype(k_ref.dtype)
    v_ref[0, 0] = y[:, 2 * gd:3 * gd].astype(v_ref.dtype)


# ---------------------------------------------------------------------------
# Kernel B: attention + output projection, accumulated over the head-group axis
# ---------------------------------------------------------------------------
def _attn_proj_kernel(q_ref, k_ref, v_ref, wo_ref, bo_ref, o_ref,
                      acc_ref, ho_ref, *, hblk, hd, compute_dtype, exp_dtype):
    g = pl.program_id(2)

    @pl.when(g == 0)
    def _init():
        acc_ref[...] = jnp.zeros_like(acc_ref)

    q = q_ref[0, 0]                                                      # (tq, Gd)
    k = k_ref[0, 0]                                                      # (N,  Gd)
    v = v_ref[0, 0]                                                      # (N,  Gd)

    exact = jnp.dtype(compute_dtype) == jnp.dtype(jnp.float32)

    for h in range(hblk):                                                # static unroll
        lo, hi = h * hd, (h + 1) * hd
        # Scores (tq, N): q_h @ k_h^T with f32 accumulation (scale folded into q).
        s = lax.dot_general(q[:, lo:hi], k[:, lo:hi], (((1,), (1,)), ((), ())),
                            preferred_element_type=jnp.float32)
        m = jnp.max(s, axis=-1, keepdims=True)
        p = jnp.exp((s - m).astype(exp_dtype))                           # EUP
        denom = jnp.sum(p.astype(jnp.float32), axis=-1, keepdims=True)   # f32 row sum
        ho = jnp.dot(p.astype(compute_dtype), v[:, lo:hi],
                     preferred_element_type=jnp.float32)                 # (tq, hd)
        if exact:
            ho = ho / denom                                              # exact f32 path
        else:
            ho = ho * pl.reciprocal(denom, approx=True)                  # EUP vrcp
        ho_ref[:, lo:hi] = ho.astype(ho_ref.dtype)                       # pack lane-dense

    # Output projection for the whole head group: contraction depth Hblk*hd.
    acc_ref[...] += jnp.dot(ho_ref[...], wo_ref[0],
                            preferred_element_type=jnp.float32)          # (tq, C)

    @pl.when(g == pl.num_programs(2) - 1)
    def _finalize():
        o_ref[0] = (acc_ref[...] + bo_ref[...]).astype(o_ref.dtype)


# ---------------------------------------------------------------------------
# Wrapper
# ---------------------------------------------------------------------------
def attention_pallas(x, w_qkv, q_bias, v_bias, w_proj, b_proj, *, num_heads,
                     qk_scale=None, compute_dtype=jnp.bfloat16, out_dtype=None):
    """Pallas forward of the Attention module.

    x:      (B, N, C)
    w_qkv:  (3*AH, C)   (PyTorch nn.Linear weight layout)
    q_bias: (AH,) or None
    v_bias: (AH,) or None
    w_proj: (C, AH)
    b_proj: (C,)
    """
    B, N, C = x.shape
    all_head_dim = w_qkv.shape[0] // 3
    head_dim = all_head_dim // num_heads
    scale = qk_scale if qk_scale is not None else head_dim ** (-0.5)
    f32 = jnp.float32
    out_dtype = out_dtype or x.dtype

    isz = jnp.dtype(compute_dtype).itemsize
    x_isz = jnp.dtype(x.dtype).itemsize
    o_isz = jnp.dtype(out_dtype).itemsize

    capacity = _vmem_capacity_bytes()
    budget = int(capacity * 0.7)
    kind = _device_kind()

    # Head blocking: 128 lanes on v5e (128-wide MXU), 256 on v6e/v7x.
    target_gd = 128 if "v5" in kind else 256
    hblk = _pick_head_block(num_heads, head_dim, target_gd)
    n_g = num_heads // hblk
    gd = hblk * head_dim

    # ---- parameter re-layout (pure layout plumbing, done once in the wrapper) ----
    def group_w(w):                     # (AH, C) -> (n_g, C, Gd), lane-contiguous per group
        return w.reshape(n_g, gd, C).transpose(0, 2, 1)

    wq = group_w(w_qkv[:all_head_dim]).astype(f32) * scale
    wk = group_w(w_qkv[all_head_dim:2 * all_head_dim]).astype(f32)
    wv = group_w(w_qkv[2 * all_head_dim:]).astype(f32)
    w_a = jnp.concatenate([wq, wk, wv], axis=-1).astype(compute_dtype)   # (n_g, C, 3*Gd)

    if q_bias is not None:
        bq = q_bias.astype(f32).reshape(n_g, 1, gd) * scale
        bv = v_bias.astype(f32).reshape(n_g, 1, gd)
    else:
        bq = jnp.zeros((n_g, 1, gd), f32)
        bv = jnp.zeros((n_g, 1, gd), f32)
    b_a = jnp.concatenate([bq, jnp.zeros_like(bq), bv], axis=-1)          # (n_g, 1, 3*Gd)

    wo = w_proj.T.reshape(n_g, gd, C).astype(compute_dtype)               # (n_g, Gd, C)
    bo = b_proj.reshape(1, C).astype(f32)

    cands = _tile_candidates(N)

    # ------------------------ Kernel A: QKV projection ------------------------
    def a_vmem(tn):
        return (2 * tn * C * x_isz             # x tile (double-buffered)
                + 2 * C * 3 * gd * isz         # fused weights
                + 2 * 3 * gd * 4               # bias
                + 2 * 3 * tn * gd * isz        # q/k/v output blocks
                + tn * 3 * gd * 4)             # f32 matmul transient

    tn = next((t for t in cands if a_vmem(t) <= budget), cands[-1])
    n_tA = N // tn

    qkv_shape = jax.ShapeDtypeStruct((B, n_g, N, gd), compute_dtype)
    a_flops = 2 * B * N * C * 3 * all_head_dim
    a_bytes = (B * N * C * x_isz
               + B * n_tA * n_g * C * 3 * gd * isz
               + 3 * B * N * all_head_dim * isz)
    vmem_a = _vmem_limit(a_vmem(tn), capacity)

    q_hm, k_hm, v_hm = pl.pallas_call(
        functools.partial(_qkv_proj_kernel, gd=gd, compute_dtype=compute_dtype),
        out_shape=(qkv_shape, qkv_shape, qkv_shape),
        grid_spec=pltpu.PrefetchScalarGridSpec(
            num_scalar_prefetch=0,
            grid=(B, n_tA, n_g),
            in_specs=[
                pl.BlockSpec((1, tn, C), lambda b, t, g: (b, t, 0)),
                pl.BlockSpec((1, C, 3 * gd), lambda b, t, g: (g, 0, 0)),
                pl.BlockSpec((1, 1, 3 * gd), lambda b, t, g: (g, 0, 0)),
            ],
            out_specs=(
                pl.BlockSpec((1, 1, tn, gd), lambda b, t, g: (b, g, t, 0)),
                pl.BlockSpec((1, 1, tn, gd), lambda b, t, g: (b, g, t, 0)),
                pl.BlockSpec((1, 1, tn, gd), lambda b, t, g: (b, g, t, 0)),
            ),
        ),
        compiler_params=pltpu.CompilerParams(
            dimension_semantics=("parallel", "parallel", "parallel"),
            vmem_limit_bytes=vmem_a),
        cost_estimate=pl.CostEstimate(flops=int(a_flops), transcendentals=0,
                                      bytes_accessed=int(a_bytes)),
    )(x, w_a, b_a)

    # --------------- Kernel B: attention + output projection ------------------
    def b_vmem(tq):
        return (2 * tq * gd * isz              # q tile (double-buffered)
                + 2 * 2 * N * gd * isz         # whole-sequence K and V
                + 2 * gd * C * isz             # wo group slice
                + 2 * C * 4                    # bo
                + 2 * tq * C * o_isz           # output tile
                + tq * C * 4                   # f32 accumulator scratch
                + tq * gd * isz                # packed head-output scratch
                + 2 * tq * N * 4)              # f32 score / prob transients

    fitting = [t for t in cands if b_vmem(t) <= budget]
    tq = fitting[0] if fitting else cands[-1]
    # Keep at least 2 parallel grid blocks so v7x's 2 TensorCores both get work.
    if B * (N // tq) < 2:
        for t in fitting:
            if B * (N // t) >= 2 and t >= min(256, N):
                tq = t
                break
    n_q = N // tq

    exp_dtype = (jnp.bfloat16
                 if (jnp.dtype(compute_dtype) == jnp.dtype(jnp.bfloat16)
                     and _bf16_eup_ok())
                 else jnp.float32)

    b_flops = 4 * B * num_heads * N * N * head_dim + 2 * B * N * all_head_dim * C
    b_trans = B * num_heads * N * N
    b_bytes = (B * num_heads * N * head_dim * isz * (1 + 2 * n_q)
               + all_head_dim * C * isz
               + B * N * C * o_isz)
    vmem_b = _vmem_limit(b_vmem(tq), capacity)

    out = pl.pallas_call(
        functools.partial(_attn_proj_kernel, hblk=hblk, hd=head_dim,
                          compute_dtype=compute_dtype, exp_dtype=exp_dtype),
        out_shape=jax.ShapeDtypeStruct((B, N, C), out_dtype),
        grid_spec=pltpu.PrefetchScalarGridSpec(
            num_scalar_prefetch=0,
            grid=(B, n_q, n_g),
            in_specs=[
                pl.BlockSpec((1, 1, tq, gd), lambda b, t, g: (b, g, t, 0)),
                pl.BlockSpec((1, 1, N, gd), lambda b, t, g: (b, g, 0, 0)),
                pl.BlockSpec((1, 1, N, gd), lambda b, t, g: (b, g, 0, 0)),
                pl.BlockSpec((1, gd, C), lambda b, t, g: (g, 0, 0)),
                pl.BlockSpec((1, C), lambda b, t, g: (0, 0)),
            ],
            out_specs=pl.BlockSpec((1, tq, C), lambda b, t, g: (b, t, 0)),
            scratch_shapes=[pltpu.VMEM((tq, C), jnp.float32),
                            pltpu.VMEM((tq, gd), compute_dtype)],
        ),
        compiler_params=pltpu.CompilerParams(
            dimension_semantics=("parallel", "parallel", "arbitrary"),
            vmem_limit_bytes=vmem_b),
        cost_estimate=pl.CostEstimate(flops=int(b_flops), transcendentals=int(b_trans),
                                      bytes_accessed=int(b_bytes)),
    )(q_hm, k_hm, v_hm, wo, bo)
    return out


# ---------------------------------------------------------------------------
# Pure-JAX reference mirroring the PyTorch forward (for validation)
# ---------------------------------------------------------------------------
def attention_reference(x, w_qkv, q_bias, v_bias, w_proj, b_proj, *, num_heads,
                        qk_scale=None):
    B, N, C = x.shape
    all_head_dim = w_qkv.shape[0] // 3
    head_dim = all_head_dim // num_heads
    scale = qk_scale if qk_scale is not None else head_dim ** (-0.5)

    if q_bias is not None:
        qkv_bias = jnp.concatenate([q_bias, jnp.zeros_like(v_bias), v_bias])
    else:
        qkv_bias = jnp.zeros((3 * all_head_dim,), dtype=x.dtype)

    qkv = x @ w_qkv.T + qkv_bias                              # (B, N, 3*AH)
    qkv = qkv.reshape(B, N, 3, num_heads, head_dim).transpose(2, 0, 3, 1, 4)
    q, k, v = qkv[0], qkv[1], qkv[2]                          # (B, H, N, hd)
    q = q * scale
    attn = q @ jnp.swapaxes(k, -2, -1)                        # (B, H, N, N)
    attn = jax.nn.softmax(attn, axis=-1)
    out = (attn @ v).transpose(0, 2, 1, 3).reshape(B, N, -1)  # (B, N, AH)
    return out @ w_proj.T + b_proj


if __name__ == "__main__":
    # Small shapes consistent with the module: dim=32, 4 heads, 8 tokens, batch 2.
    B, N, C = 2, 8, 32
    num_heads = 4
    head_dim = C // num_heads
    all_head_dim = head_dim * num_heads

    key = jax.random.PRNGKey(0)
    kx, kw1, kb1q, kb1v, kw2, kb2 = jax.random.split(key, 6)

    x = jax.random.normal(kx, (B, N, C), dtype=jnp.float32)
    # Deterministic "trained-like" parameters (qkv_bias=True configuration).
    w_qkv = 0.02 * jax.random.normal(kw1, (3 * all_head_dim, C), dtype=jnp.float32)
    q_bias = 0.02 * jax.random.normal(kb1q, (all_head_dim,), dtype=jnp.float32)
    v_bias = 0.02 * jax.random.normal(kb1v, (all_head_dim,), dtype=jnp.float32)
    w_proj = 0.02 * jax.random.normal(kw2, (C, all_head_dim), dtype=jnp.float32)
    b_proj = 0.02 * jax.random.normal(kb2, (C,), dtype=jnp.float32)

    ref = attention_reference(x, w_qkv, q_bias, v_bias, w_proj, b_proj,
                              num_heads=num_heads)

    # Default production configuration: bf16 MXU operands, f32 accumulation.
    out_bf16 = jax.block_until_ready(
        attention_pallas(x, w_qkv, q_bias, v_bias, w_proj, b_proj,
                         num_heads=num_heads))
    assert out_bf16.shape == (B, N, C)
    assert jnp.allclose(out_bf16.astype(jnp.float32), ref, atol=2e-2, rtol=2e-2), \
        "Pallas (bf16 operands) output mismatch vs reference"

    # f32 operand path (exact softmax division) for a tighter numerical check.
    out_f32 = jax.block_until_ready(
        attention_pallas(x, w_qkv, q_bias, v_bias, w_proj, b_proj,
                         num_heads=num_heads, compute_dtype=jnp.float32))
    assert jnp.allclose(out_f32, ref, atol=2e-3, rtol=2e-2), \
        "Pallas (f32 operands) output mismatch vs reference"

    # TODO(synk): the surrounding PretrainVisionTransformer plumbing (Conv3d patch
    # embed, boolean-mask token gather, LayerNorm/MLP residual stack, sinusoidal
    # pos-embed, mask-token concat, decoder head) stays in plain JAX/XLA; only the
    # Attention hot path is a Pallas kernel here.
    print("KERNEL_OK")
</pallas_src>

<mosaic_0001>
module attributes {stable_mosaic.version = 11 : i64} {
  func.func @_qkv_proj_kernel(%arg0: i32, %arg1: i32, %arg2: i32, %arg3: memref<1x8x32xf32, #tpu.memory_space<vmem>>, %arg4: memref<1x32x96xbf16, #tpu.memory_space<vmem>>, %arg5: memref<1x1x96xf32, #tpu.memory_space<vmem>>, %arg6: memref<1x1x8x32xbf16, #tpu.memory_space<vmem>>, %arg7: memref<1x1x8x32xbf16, #tpu.memory_space<vmem>>, %arg8: memref<1x1x8x32xbf16, #tpu.memory_space<vmem>>) attributes {dimension_semantics = [#tpu.dimension_semantics<parallel>, #tpu.dimension_semantics<parallel>, #tpu.dimension_semantics<parallel>], iteration_bounds = array<i64: 2, 1, 1>, scalar_prefetch = 0 : i64, scratch_operands = 0 : i64, tpu.core_type = #tpu.core_type<tc>, window_params = [{transform_indices = @transform_0, window_bounds = array<i64: 1, 8, 32>}, {transform_indices = @transform_1, window_bounds = array<i64: 1, 32, 96>}, {transform_indices = @transform_2, window_bounds = array<i64: 1, 1, 96>}, {transform_indices = @transform_3, window_bounds = array<i64: 1, 1, 8, 32>}, {transform_indices = @transform_4, window_bounds = array<i64: 1, 1, 8, 32>}, {transform_indices = @transform_5, window_bounds = array<i64: 1, 1, 8, 32>}]} {
    %c0 = arith.constant 0 : index
    %c0_0 = arith.constant 0 : index
    %c0_1 = arith.constant 0 : index
    %0 = vector.load %arg3[%c0, %c0_0, %c0_1] : memref<1x8x32xf32, #tpu.memory_space<vmem>>, vector<1x8x32xf32>
    %1 = vector.shape_cast %0 : vector<1x8x32xf32> to vector<8x32xf32>
    %2 = arith.truncf %1 : vector<8x32xf32> to vector<8x32xbf16>
    %c0_2 = arith.constant 0 : index
    %c0_3 = arith.constant 0 : index
    %c0_4 = arith.constant 0 : index
    %3 = vector.load %arg4[%c0_2, %c0_3, %c0_4] : memref<1x32x96xbf16, #tpu.memory_space<vmem>>, vector<1x32x96xbf16>
    %4 = vector.shape_cast %3 : vector<1x32x96xbf16> to vector<32x96xbf16>
    %cst = arith.constant dense<0.000000e+00> : vector<8x96xf32>
    %5 = tpu.matmul %2, %4, %cst {dimension_numbers = #tpu.dot_dimension_numbers<[1], [0], [0], [1], [0, 0, 1, 1], [], []>} : vector<8x32xbf16>, vector<32x96xbf16>, vector<8x96xf32> -> vector<8x96xf32>
    %c0_5 = arith.constant 0 : index
    %c0_6 = arith.constant 0 : index
    %c0_7 = arith.constant 0 : index
    %6 = vector.load %arg5[%c0_5, %c0_6, %c0_7] : memref<1x1x96xf32, #tpu.memory_space<vmem>>, vector<1x1x96xf32>
    %7 = vector.shape_cast %6 : vector<1x1x96xf32> to vector<1x96xf32>
    %8 = vector.broadcast %7 : vector<1x96xf32> to vector<8x96xf32>
    %9 = arith.addf %5, %8 : vector<8x96xf32>
    %10 = vector.extract_strided_slice %9 {offsets = [0, 0], sizes = [8, 32], strides = [1, 1]} : vector<8x96xf32> to vector<8x32xf32>
    %11 = arith.truncf %10 : vector<8x32xf32> to vector<8x32xbf16>
    %c0_8 = arith.constant 0 : index
    %c0_9 = arith.constant 0 : index
    %c0_10 = arith.constant 0 : index
    %c0_11 = arith.constant 0 : index
    %12 = vector.load %arg6[%c0_8, %c0_9, %c0_10, %c0_11] : memref<1x1x8x32xbf16, #tpu.memory_space<vmem>>, vector<1x1x8x32xbf16>
    %13 = vector.shape_cast %12 : vector<1x1x8x32xbf16> to vector<8x32xbf16>
    %14 = vector.shape_cast %11 : vector<8x32xbf16> to vector<1x1x8x32xbf16>
    tpu.vector_store %arg6[%c0_8, %c0_9, %c0_10, %c0_11], %14 {strides = array<i32>} : memref<1x1x8x32xbf16, #tpu.memory_space<vmem>>, vector<1x1x8x32xbf16>,
    %15 = vector.extract_strided_slice %9 {offsets = [0, 32], sizes = [8, 32], strides = [1, 1]} : vector<8x96xf32> to vector<8x32xf32>
    %16 = arith.truncf %15 : vector<8x32xf32> to vector<8x32xbf16>
    %c0_12 = arith.constant 0 : index
    %c0_13 = arith.constant 0 : index
    %c0_14 = arith.constant 0 : index
    %c0_15 = arith.constant 0 : index
    %17 = vector.load %arg7[%c0_12, %c0_13, %c0_14, %c0_15] : memref<1x1x8x32xbf16, #tpu.memory_space<vmem>>, vector<1x1x8x32xbf16>
    %18 = vector.shape_cast %17 : vector<1x1x8x32xbf16> to vector<8x32xbf16>
    %19 = vector.shape_cast %16 : vector<8x32xbf16> to vector<1x1x8x32xbf16>
    tpu.vector_store %arg7[%c0_12, %c0_13, %c0_14, %c0_15], %19 {strides = array<i32>} : memref<1x1x8x32xbf16, #tpu.memory_space<vmem>>, vector<1x1x8x32xbf16>,
    %20 = vector.extract_strided_slice %9 {offsets = [0, 64], sizes = [8, 32], strides = [1, 1]} : vector<8x96xf32> to vector<8x32xf32>
    %21 = arith.truncf %20 : vector<8x32xf32> to vector<8x32xbf16>
    %c0_16 = arith.constant 0 : index
    %c0_17 = arith.constant 0 : index
    %c0_18 = arith.constant 0 : index
    %c0_19 = arith.constant 0 : index
    %22 = vector.load %arg8[%c0_16, %c0_17, %c0_18, %c0_19] : memref<1x1x8x32xbf16, #tpu.memory_space<vmem>>, vector<1x1x8x32xbf16>
    %23 = vector.shape_cast %22 : vector<1x1x8x32xbf16> to vector<8x32xbf16>
    %24 = vector.shape_cast %21 : vector<8x32xbf16> to vector<1x1x8x32xbf16>
    tpu.vector_store %arg8[%c0_16, %c0_17, %c0_18, %c0_19], %24 {strides = array<i32>} : memref<1x1x8x32xbf16, #tpu.memory_space<vmem>>, vector<1x1x8x32xbf16>,
    return
  }
  func.func @transform_0(%arg0: i32, %arg1: i32, %arg2: i32) -> (i32, i32, i32) {
    %c0_i32 = arith.constant 0 : i32
    %c0_i32_0 = arith.constant 0 : i32
    return %arg0, %arg1, %c0_i32 : i32, i32, i32
  }
  func.func @transform_1(%arg0: i32, %arg1: i32, %arg2: i32) -> (i32, i32, i32) {
    %c0_i32 = arith.constant 0 : i32
    %c0_i32_0 = arith.constant 0 : i32
    %c0_i32_1 = arith.constant 0 : i32
    return %arg2, %c0_i32, %c0_i32_0 : i32, i32, i32
  }
  func.func @transform_2(%arg0: i32, %arg1: i32, %arg2: i32) -> (i32, i32, i32) {
    %c0_i32 = arith.constant 0 : i32
    %c0_i32_0 = arith.constant 0 : i32
    %c0_i32_1 = arith.constant 0 : i32
    return %arg2, %c0_i32, %c0_i32_0 : i32, i32, i32
  }
  func.func @transform_3(%arg0: i32, %arg1: i32, %arg2: i32) -> (i32, i32, i32, i32) {
    %c0_i32 = arith.constant 0 : i32
    %c0_i32_0 = arith.constant 0 : i32
    return %arg0, %arg2, %arg1, %c0_i32 : i32, i32, i32, i32
  }
  func.func @transform_4(%arg0: i32, %arg1: i32, %arg2: i32) -> (i32, i32, i32, i32) {
    %c0_i32 = arith.constant 0 : i32
    %c0_i32_0 = arith.constant 0 : i32
    return %arg0, %arg2, %arg1, %c0_i32 : i32, i32, i32, i32
  }
  func.func @transform_5(%arg0: i32, %arg1: i32, %arg2: i32) -> (i32, i32, i32, i32) {
    %c0_i32 = arith.constant 0 : i32
    %c0_i32_0 = arith.constant 0 : i32
    return %arg0, %arg2, %arg1, %c0_i32 : i32, i32, i32, i32
  }
}

</mosaic_0001>

<bundles_post_ra>
// kernel: tpu_custom_call.1
= control target key start
LH: loop header
LB: loop body
LE: loop exit
PB: predicated region body
PF: predicated region fallthrough
CT: control target
= control target key end

     0   :  { %s1179_s0 = inlined_call_operand.hbm [shape: f32[2,8,32], index: 0, kind: input, shape index: {}]   ;;  %s1180_s1 = inlined_call_operand.hbm [shape: bf16[1,32,96], index: 1, kind: input, shape index: {}]   ;;  %s1181_s2 = inlined_call_operand.vmem [shape: f32[1,1,96], index: 2, kind: input, shape index: {}]   ;;  %s1182_s3 = inlined_call_operand.hbm [shape: bf16[2,1,8,32], index: 3, kind: output, shape index: {0}]   ;;  %s1183_s4 = inlined_call_operand.hbm [shape: bf16[2,1,8,32], index: 4, kind: output, shape index: {1}]   ;;  %s1184_s5 = inlined_call_operand.hbm [shape: bf16[2,1,8,32], index: 5, kind: output, shape index: {2}]  }
   0x1   :  { %1186 = sst [smem:[#allocation15_spill]] %s1179_s0 }
   0x2   :  { %11 = vsyncpa [#allocation3], 0 }
   0x3   :  { %13 = vsyncpa [#allocation3 + $0x1], 0 }
   0x4   :  { %14 = vsyncpa [#allocation6], 0 }
   0x5   :  { %15 = vsyncpa [#allocation4], 0 }
   0x6   :  { %17 = vsyncpa [#allocation4 + $0x1], 0 }
   0x7   :  { %18 = vsyncpa [#allocation9], 0 }
   0x8   :  { %20 = vsyncpa [#allocation9 + $0x1], 0  ;;  %s984_s18 = smov 0   ;;  %s986_s19 = smov 0  }
   0x9   :  { %s988_s20 = smov 0   ;;  %s990_s21 = smov 0  }
   0xa   :  { %s992_s22 = smov 0   ;;  %s994_s23 = smov 0  }
   0xb LB: > { %s1015_s24 = sadd.s32 4294967295, %s947_s23   ;;  %p622_p0 = scmp.ge.s32.totalorder %s947_s23, 1  ;;  %s947_s23 = sphi %s994_s23, %s26_s23   ;;  %s943_s22 = sphi %s992_s22, %s1198_s22   ;;  %s939_s21 = sphi %s990_s21, %s1197_s21   ;;  %s935_s20 = sphi %s988_s20, %s1196_s20   ;;  %s931_s19 = sphi %s986_s19, %s1195_s19   ;;  %s927_s18 = sphi %s984_s18, %s1194_s18  }
   0xc   : > { %p68_p1 = scmp.eq.s32.totalorder %s1015_s24, 0  ;;  %p220_p2 = scmp.lt.s32.totalorder %s947_s23, 3 }
   0xd   : > { %s234_s27 = sshll.u32 %s1180_s1, 4  ;;  %s949_s29 = smov [#allocation5]   ;;  %s235_s27 = int_to_ptr.hbm [resolvable:$true] %s234_s27 }
   0xe   : > { %p1023_p3 = pnand %p622_p0, %p220_p2  ;;  %s236_s30 = sshll.u32 %s949_s29, 4  ;;  %s237_s30 = int_to_ptr.vmem [resolvable:$true] %s236_s30 }
   0xf   : > { %p625_p6 = scmp.ge.s32.totalorder %s947_s23, 2  ;;  %s950_s6 = smov 64  }
  0x10   : > { %p665_p4 = pneg %p1023_p3  ;;  %s951_s7 = smov 4  }
  0x11   : > { %s1185_s8 = sadd.s32 4294967294, %s947_s23   ;;  %s45_s9 = sadd.s32 1, %s943_s22 }
  0x12   : > { %p666_p5 = pnand %p665_p4, %p68_p1  ;;  %s54_s10 = sadd.s32 1, %s935_s20 }
  0x13   : > { %p47_p7 = scmp.ge.s32.totalorder %s45_s9, 2  ;;  %p61_p8 = scmp.ne.s32.totalorder %s935_s20, %s931_s19 }
  0x14   : > { %668 = dma.hbm_to_vmem [thread:$0]  (!%p666_p5), %s235_s27, 256, %s237_s30, [#allocation6], %s950_s6, %s950_s6, %s951_s7  }
  0x15   : > { %p62_p9 = scmp.eq.s32.totalorder %s947_s23, 0  ;;  %p67_p10 = scmp.ne.s32.totalorder %s931_s19, %s927_s18 }
  0x16   : > { %s1200_s9 = smov (%p47_p7, %s45_s9), 0  ;;  %p147_p13 = scmp.eq.s32.totalorder %s1015_s24, 1 }
  0x17   : > { %p1042_p11 = por %p62_p9, %p61_p8  ;;  %p1048_p12 = por %p68_p1, %p67_p10 }
  0x18   : > { %s49_s13 = ssub.s32 %s943_s22, %s1200_s9  ;;  %p153_p2 = scmp.eq.s32.totalorder %s1185_s8, 1 }
  0x19   : > { %p52_p0 = scmp.eq.s32.totalorder %s49_s13, 0  ;;  %p1057_p4 = por %p147_p13, %p61_p8 }
  0x1a   : > { %p684_p5 = scmp.lt.s32.totalorder %s947_s23, 2  ;;  %p1065_p7 = por %p153_p2, %p67_p10 }
  0x1b   : > { %s1063_s15 = scalar_select %p52_p0, %s935_s20, %s54_s10  }
  0x1c   : > { %s256_s17 = sand.u32 1, %s935_s20   ;;  %s627_s26 = sshll.u32 %s943_s22, 3 }
  0x1d   : > { %s626_s25 = sshll.u32 %s256_s17, 3  ;;  %s1192_s0 = sld [smem:[#allocation15_spill]] }
  0x1e   : > { %s260_s6 = scalar_lea.vmem [#allocation2], %s626_s25  ;;  %p670_p8 = pnand %p684_p5, %p1042_p11 }
  0x1f   : > { %s269_s7 = sshll.u32 %s260_s6, 4  ;;  %s257_s10 = scalar_lea.sflag [#allocation3], %s256_s17  ;;  %s270_s7 = int_to_ptr.vmem [resolvable:$true] %s269_s7 }
  0x20   : > { %s1079_s8 = sand.u32 (!%p1023_p3), 1, %s931_s19  }
  0x21   : > { %278 = sbr.rel (%p1023_p3) target bundleno = 310 (0x136), region = 32  ;;  %s629_s27 = sshll.u32 (!%p1023_p3), %s1079_s8, 3 }
  0x22   : > { %s284_s25 = scalar_lea.vmem (!%p1023_p3), [#allocation2], %s629_s27 }
  0x23   : > { %s265_s30 = scalar_lea.hbm %s1192_s0, %s627_s26  ;;  %s281_s26 = scalar_lea.sflag (!%p1023_p3), [#allocation3], %s1079_s8 }
  0x24   : > { %s267_s13 = sshll.u32 %s265_s30, 4  ;;  %s268_s13 = int_to_ptr.hbm [resolvable:$true] %s267_s13 }
  0x25   : > { %672 = dma.hbm_to_vmem [thread:$0]  (!%p670_p8), %s268_s13, 128, %s270_s7, %s257_s10  }
  0x26   : > { %910 = dma.done.wait (%p1048_p12), %s281_s26, 128  }
  0x27   : > { %912 = vsyncadd (%p1048_p12), %s281_s26, 4294967168 }
  0x28   : > { %914 = dma.done.wait (%p68_p1), [#allocation6], 256  }
  0x29   : > { %916 = vsyncadd (%p68_p1), [#allocation6], 4294967040  ;;  %v652_v0 = vld [vmem:[#allocation5 + $0x8] sm:$0xff]  ;;  %v651_v1 = vld [vmem:[#allocation5] sm:$0xff]  ;;  %vm356_vm0 = vcmask 261120   ;;  %s1095_s12 = sshll.u32 %s1079_s8, 2 }
  0x2a   : > { %366 = vmatpush.bf16.msra.mxu0 %v652_v0  ;;  %v334_v2 = vld [vmem:[%s284_s25] sm:$0xff]  ;;  %s1098_s17 = sshll.u32 %s939_s21, 2  ;;  %vm374_vm1 = vcmask 257024   ;;  %s315_s7 = scalar_lea.vmem [#allocation7], %s1095_s12 }
  0x2b   : > { %v335_v3 = vpack.c.bf16 %v334_v2, %v334_v2  ;;  %v740_v4 = vld [vmem:[%s1181_s2] ss:$0 sm:$0xff]  ;;  %s408_s6 = scalar_lea.hbm %s1182_s3, %s1098_s17  ;;  %s410_s13 = sshll.u32 %s315_s7, 4  ;;  %s411_s13 = int_to_ptr.vmem [resolvable:$true] %s410_s13 }
  0x2c   : > { %s412_s10 = sshll.u32 %s408_s6, 4  ;;  %s952_s27 = smov 96   ;;  %s413_s10 = int_to_ptr.hbm [resolvable:$true] %s412_s10 }
  0x2d   : > { %s386_s21 = scalar_lea.sflag [#allocation4], %s1079_s8  ;;  %s815_s26 = sshra.s32 %s413_s10, 4  ;;  %s816_s26 = int_to_ptr.hbm [resolvable:$true] %s815_s26 }
  0x2e   : > { %367 = vmatpush.bf16.msra.mxu0 %v651_v1  ;;  %s817_s25 = scalar_lea.hbm %s816_s26, 4  ;;  %s821_s29 = scalar_lea.hbm %s1182_s3, 8 }
  0x2f   : > { %p818_p1 = scmp.ne.s32.totalorder %s816_s26, %s817_s25  ;;  %p822_p10 = scmp.lt.s32.totalorder %s816_s26, %s1182_s3 }
  0x30   : > { %p823_p11 = scmp.lt.s32.totalorder %s821_s29, %s817_s25 }
  0x31   : > { %642 = vmatmul.msk.bf16.vlgmr.msra.gmra.mxu0 %vm356_vm0, %v335_v3  ;;  %p819_p3 = pnand %p818_p1, %p1057_p4 }
  0x32   : > { %p824_p12 = por %p823_p11, %p822_p10 }
  0x33   : > { %p820_p9 = pneg %p819_p3 }
  0x35   : > { %p825_p13 = pnand %p824_p12, %p820_p9 }
  0xae   : > { %v369_v5 = vpop.f32.mrf.mxu0 }
  0xaf   : > { %v370_v6 = vadd.f32 %v740_v4, %v369_v5 }
  0xb1   : > { %v373_v7 = vpack.c.bf16 %v370_v6, %v370_v6 }
  0xb3   : > { %377 = vrot.lane.b32.xlu0 %v373_v7, %s952_s27  ;;  %375 = vst.msk [vmem:[%s315_s7] sm:$0xf] %vm374_vm1, %v373_v7 }
  0xb4   : > { %828 = shalt.err (!%p825_p13)
}
  0xb5   : > { %659 = dma.vmem_to_hbm [thread:$0]  (%p1057_p4), %s411_s13, 64, %s413_s10, %s386_s21  }
  0xb6   : > { %v371_v8 = vpop.f32.mrf.mxu0  ;;  %s953_s8 = smov 64   ;;  %s424_s28 = scalar_lea.hbm %s1183_s4, %s1098_s17 }
  0xb7   : > { %s390_s26 = sand.u32 1, %s1015_s24   ;;  %s322_s25 = scalar_lea.vmem [#allocation8], %s1095_s12 }
  0xb8   : > { %s426_s11 = sshll.u32 %s322_s25, 4  ;;  %s428_s29 = sshll.u32 %s424_s28, 4  ;;  %s427_s11 = int_to_ptr.vmem [resolvable:$true] %s426_s11  ;;  %s429_s29 = int_to_ptr.hbm [resolvable:$true] %s428_s29 }
  0xb9   : > { %s440_s13 = scalar_lea.hbm %s1184_s5, %s1098_s17  ;;  %s1128_s10 = scalar_lea.sflag [#allocation9], %s390_s26 }
  0xba   : > { %s843_s21 = sshra.s32 %s429_s29, 4  ;;  %s849_s27 = scalar_lea.hbm %s1183_s4, 8  ;;  %s844_s21 = int_to_ptr.hbm [resolvable:$true] %s843_s21 }
  0xbb   : > { %381 = vrot.lane.b32.xlu0 %v373_v7, %s953_s8  ;;  %s845_s8 = scalar_lea.hbm %s844_s21, 4  ;;  %p850_p8 = scmp.lt.s32.totalorder %s844_s21, %s1183_s4 }
  0xbc   : > { %p846_p0 = scmp.ne.s32.totalorder %s844_s21, %s845_s8  ;;  %p851_p1 = scmp.lt.s32.totalorder %s849_s27, %s845_s8 }
  0xbe   : > { %p847_p2 = pnand %p846_p0, %p1057_p4  ;;  %p852_p3 = por %p851_p1, %p850_p8 }
  0xc0   : > { %p848_p5 = pneg %p847_p2 }
  0xc2   : > { %p853_p9 = pnand %p852_p3, %p848_p5 }
 0x125   : > { %v378_v9 = vpop.permute.xlu0 %377 }
 0x126   : > { %380 = vst.msk [vmem:[%s322_s25] sm:$0xf] %vm374_vm1, %v378_v9 }
 0x127   : > { %856 = shalt.err (!%p853_p9)
}
 0x128   : > { %660 = dma.vmem_to_hbm [thread:$0]  (%p1057_p4), %s427_s11, 64, %s429_s29, %s1128_s10  }
 0x129   : > { %s329_s17 = scalar_lea.vmem [#allocation10], %s1095_s12  ;;  %s444_s25 = sshll.u32 %s440_s13, 4  ;;  %s445_s25 = int_to_ptr.hbm [resolvable:$true] %s444_s25 }
 0x12a   : > { %s442_s26 = sshll.u32 %s329_s17, 4  ;;  %s871_s0 = sshra.s32 %s445_s25, 4  ;;  %s443_s26 = int_to_ptr.vmem [resolvable:$true] %s442_s26  ;;  %s872_s0 = int_to_ptr.hbm [resolvable:$true] %s871_s0 }
 0x12b   : > { %s873_s30 = scalar_lea.hbm %s872_s0, 4  ;;  %s877_s8 = scalar_lea.hbm %s1184_s5, 8 }
 0x12c   : > { %p874_p10 = scmp.ne.s32.totalorder %s872_s0, %s873_s30  ;;  %p878_p13 = scmp.lt.s32.totalorder %s872_s0, %s1184_s5 }
 0x12d   : > { %v382_v10 = vpop.permute.xlu0 %381  ;;  %p879_p0 = scmp.lt.s32.totalorder %s877_s8, %s873_s30 }
 0x12e   : > { %384 = vst.msk [vmem:[%s329_s17] sm:$0xf] %vm374_vm1, %v382_v10  ;;  %p875_p11 = pnand %p874_p10, %p1057_p4 }
 0x12f   : > { %p880_p2 = por %p879_p0, %p878_p13 }
 0x130   : > { %p876_p12 = pneg %p875_p11 }
 0x132   : > { %p881_p5 = pnand %p880_p2, %p876_p12 }
 0x134   : > { %884 = shalt.err (!%p881_p5)
}
 0x135   : > { %661 = dma.vmem_to_hbm [thread:$0]  (%p1057_p4), %s443_s26, 64, %s445_s25, %s1128_s10  }
 0x136 PF: > { %s456_s29 = sand.u32 1, %s927_s18   ;;  %p674_p8 = pnand %p625_p6, %p1065_p7 }
 0x137   : > { %s457_s13 = scalar_lea.sflag [#allocation4], %s456_s29 }
 0x138   : > { %p675_p1 = pneg %p674_p8 }
 0x13a   : > { %918 = dma.done.wait (%p675_p1), %s457_s13, 64  }
 0x13b   : > { %920 = vsyncadd (%p675_p1), %s457_s13, 4294967232  ;;  %s1193_s24 = sadd.s32 4294967294, %s947_s23  }
 0x13c   : > { %s466_s7 = sand.u32 1, %s1193_s24  }
 0x13d   : > { %s467_s27 = scalar_lea.sflag [#allocation9], %s466_s7 }
 0x13e   : > { %922 = dma.done.wait (%p675_p1), %s467_s27, 128  }
 0x13f   : > { %924 = vsyncadd (%p675_p1), %s467_s27, 4294967168  ;;  %s26_s23 = sadd.s32 1, %s947_s23   ;;  %s1194_s18 = smov %s931_s19 }
 0x140   : > { %p23_p4 = scmp.ge.s32.totalorder %s26_s23, 4   ;;  %s1195_s19 = smov %s935_s20 }
 0x141   : > { %s1196_s20 = smov %s1063_s15  ;;  %s1197_s21 = smov %s943_s22 }
 0x142   : > { %s1198_s22 = smov %s1200_s9  ;;  %25 = sbr.rel (!%p23_p4) target bundleno = 11 (0xb), region = 117 }
 0x147   :  { %483 = vsyncpa [#allocation3], 1 }
 0x148   :  { %485 = vsyncpa [#allocation3 + $0x1], 1 }
 0x149   :  { %486 = vsyncpa [#allocation6], 1 }
 0x14a   :  { %487 = vsyncpa [#allocation4], 1 }
 0x14b   :  { %489 = vsyncpa [#allocation4 + $0x1], 1 }
 0x14c   :  { %490 = vsyncpa [#allocation9], 1 }
 0x14d   :  { %492 = vsyncpa [#allocation9 + $0x1], 1 }

</bundles_post_ra>
